<compile_context>
chip_gen: v7x
topology: tpu7x:2x2x1
jax: 0.10.0
libtpu: 0.0.40
codegen_flags: <defaults>
</compile_context>

<pallas_src>
import functools

import jax
import jax.numpy as jnp
from jax import lax
from jax.experimental import pallas as pl
from jax.experimental.pallas import tpu as pltpu


def _stfe_kernel(x_ref, w1_ref, b1_ref, w2_ref, b2_ref, o_ref, *, seq_len):
    # x_ref: (B*L, Cin), w1_ref: (3, Cin, 3H), b1_ref: (1, 3H),
    # w2_ref: (3, 3H, H), b2_ref: (1, H),      o_ref: (B*L, H)
    n = x_ref.shape[0]

    # Per-row position within its sequence (computed once, reused by both convs).
    t = lax.broadcasted_iota(jnp.int32, (n, 1), 0) % seq_len
    is_first = t == 0                # conv pad row / batch-boundary on the left
    is_last = t == seq_len - 1       # conv pad row / batch-boundary on the right

    def conv3(inp, w_ref, b_ref):
        """y[r] = inp[r-1]@w[0] + inp[r]@w[1] + inp[r+1]@w[2] + b, with zero
        padding at per-sequence boundaries.  All MXU operands stay aligned; the
        shift happens on the outputs via pltpu.roll + row mask."""
        z0 = jnp.dot(inp, w_ref[0], preferred_element_type=jnp.float32)
        z1 = jnp.dot(inp, w_ref[1], preferred_element_type=jnp.float32)
        z2 = jnp.dot(inp, w_ref[2], preferred_element_type=jnp.float32)
        left = jnp.where(is_first, 0.0, pltpu.roll(z0, shift=1, axis=0))
        right = jnp.where(is_last, 0.0, pltpu.roll(z2, shift=n - 1, axis=0))
        return z1 + left + right + b_ref[...]

    # ---- conv1 ----
    y1 = conv3(x_ref[...], w1_ref, b1_ref)                     # (N, 3H)

    # ---- softmax over channels (lane axis) ----
    m = jnp.max(y1, axis=-1, keepdims=True)
    p = jnp.exp(y1 - m)
    y1 = p * pl.reciprocal(jnp.sum(p, axis=-1, keepdims=True), approx=True)

    # ---- conv2 ----
    y2 = conv3(y1, w2_ref, b2_ref)                              # (N, H)

    o_ref[...] = y2.astype(o_ref.dtype)


@jax.jit
def short_term_feature_extractor(x, w1, b1, w2, b2):
    """x: (B, L, Cin) float32 -> (B, L, H) float32."""
    B, L, Cin = x.shape
    H = w2.shape[-1]
    # Fold batch into the matmul row dimension: one kernel invocation, all
    # operands resident in VMEM (tiny problem), no grid.
    x2d = x.reshape(B * L, Cin)
    out = pl.pallas_call(
        functools.partial(_stfe_kernel, seq_len=L),
        out_shape=jax.ShapeDtypeStruct((B * L, H), jnp.float32),
        # No grid / BlockSpecs: whole-array blocks in VMEM (single invocation).
    )(x2d, w1, b1, w2, b2)
    return out.reshape(B, L, H)


def _reference(x, w1, b1, w2, b2):
    """Pure-JAX reference (channels-last conv via lax.conv_general_dilated)."""
    def conv1d(inp, w, b):  # inp (B,L,Cin), w (3,Cin,Cout)
        out = lax.conv_general_dilated(
            inp, w, window_strides=(1,), padding=((1, 1),),
            dimension_numbers=("NWC", "WIO", "NWC"))
        return out + b[None, :]
    y = conv1d(x, w1, b1)
    y = jax.nn.softmax(y, axis=-1)      # channel softmax (channels-last here)
    y = conv1d(y, w2, b2)
    return y


if __name__ == "__main__":
    # config-implied small shapes
    batch_size = 2
    seq_len = 8
    input_dim = 4
    hidden_dim = 32
    H3 = hidden_dim * 3

    key = jax.random.PRNGKey(0)
    kx, kw1, kb1, kw2, kb2 = jax.random.split(key, 5)

    # Deterministic param init (PyTorch Conv1d default: U(-1/sqrt(fan_in), 1/sqrt(fan_in)))
    fan1 = input_dim * 3
    fan2 = H3 * 3
    w1 = jax.random.uniform(kw1, (3, input_dim, H3), jnp.float32,
                            -1.0 / fan1 ** 0.5, 1.0 / fan1 ** 0.5)
    b1 = jax.random.uniform(kb1, (1, H3), jnp.float32,
                            -1.0 / fan1 ** 0.5, 1.0 / fan1 ** 0.5)
    w2 = jax.random.uniform(kw2, (3, H3, hidden_dim), jnp.float32,
                            -1.0 / fan2 ** 0.5, 1.0 / fan2 ** 0.5)
    b2 = jax.random.uniform(kb2, (1, hidden_dim), jnp.float32,
                            -1.0 / fan2 ** 0.5, 1.0 / fan2 ** 0.5)

    x = jax.random.normal(kx, (batch_size, seq_len, input_dim), jnp.float32)

    out = short_term_feature_extractor(x, w1, b1, w2, b2)
    out = jax.block_until_ready(out)

    ref = _reference(x, w1, b1[0], w2, b2[0])
    assert out.shape == (batch_size, seq_len, hidden_dim)
    # Tolerance 1e-3 for pl.reciprocal(approx=True) in the softmax; observed errors
    # are orders of magnitude smaller.
    assert jnp.allclose(out, ref, atol=1e-3, rtol=1e-3), \
        f"max abs err {jnp.max(jnp.abs(out - ref))}"

    print("KERNEL_OK")
</pallas_src>

<mosaic_0001>
module attributes {stable_mosaic.version = 11 : i64} {
  func.func @_stfe_kernel(%arg0: memref<16x4xf32, #tpu.memory_space<vmem>>, %arg1: memref<3x4x96xf32, #tpu.memory_space<vmem>>, %arg2: memref<1x96xf32, #tpu.memory_space<vmem>>, %arg3: memref<3x96x32xf32, #tpu.memory_space<vmem>>, %arg4: memref<1x32xf32, #tpu.memory_space<vmem>>, %arg5: memref<16x32xf32, #tpu.memory_space<vmem>>) attributes {dimension_semantics = [], scalar_prefetch = 0 : i64, scratch_operands = 0 : i64, tpu.core_type = #tpu.core_type<tc>} {
    %0 = tpu.iota {dimensions = array<i32: 0>} : vector<16x1xi32>
    %c8_i32 = arith.constant 8 : i32
    %c0_i32 = arith.constant 0 : i32
    %1 = arith.cmpi eq, %c8_i32, %c0_i32 : i32
    %c1_i32 = arith.constant 1 : i32
    %2 = arith.select %1, %c1_i32, %c8_i32 : i32
    %3 = vector.broadcast %2 : i32 to vector<16x1xi32>
    %4 = arith.remsi %0, %3 : vector<16x1xi32>
    %c0_i32_0 = arith.constant 0 : i32
    %5 = vector.broadcast %c0_i32_0 : i32 to vector<16x1xi32>
    %6 = arith.cmpi ne, %4, %5 : vector<16x1xi32>
    %c0_i32_1 = arith.constant 0 : i32
    %7 = vector.broadcast %c0_i32_1 : i32 to vector<16x1xi32>
    %8 = arith.cmpi slt, %4, %7 : vector<16x1xi32>
    %c0_i32_2 = arith.constant 0 : i32
    %9 = arith.cmpi slt, %2, %c0_i32_2 : i32
    %10 = vector.broadcast %9 : i1 to vector<16x1xi1>
    %11 = vector.broadcast %10 : vector<16x1xi1> to vector<16x1xi1>
    %12 = arith.xori %8, %11 : vector<16x1xi1>
    %13 = arith.andi %12, %6 : vector<16x1xi1>
    %14 = vector.broadcast %2 : i32 to vector<16x1xi32>
    %15 = arith.addi %4, %14 : vector<16x1xi32>
    %16 = arith.select %13, %15, %4 : vector<16x1xi1>, vector<16x1xi32>
    %c0_i32_3 = arith.constant 0 : i32
    %17 = vector.broadcast %c0_i32_3 : i32 to vector<16x1xi32>
    %18 = arith.cmpi eq, %16, %17 : vector<16x1xi32>
    %c7_i32 = arith.constant 7 : i32
    %19 = vector.broadcast %c7_i32 : i32 to vector<16x1xi32>
    %20 = arith.cmpi eq, %16, %19 : vector<16x1xi32>
    %c0 = arith.constant 0 : index
    %c0_4 = arith.constant 0 : index
    %21 = vector.load %arg0[%c0, %c0_4] : memref<16x4xf32, #tpu.memory_space<vmem>>, vector<16x4xf32>
    %c0_5 = arith.constant 0 : index
    %c0_6 = arith.constant 0 : index
    %c0_7 = arith.constant 0 : index
    %22 = vector.load %arg1[%c0_5, %c0_6, %c0_7] : memref<3x4x96xf32, #tpu.memory_space<vmem>>, vector<1x4x96xf32>
    %23 = vector.shape_cast %22 : vector<1x4x96xf32> to vector<4x96xf32>
    %cst = arith.constant dense<0.000000e+00> : vector<16x96xf32>
    %24 = tpu.matmul %21, %23, %cst {dimension_numbers = #tpu.dot_dimension_numbers<[1], [0], [0], [1], [0, 0, 1, 1], [], []>} : vector<16x4xf32>, vector<4x96xf32>, vector<16x96xf32> -> vector<16x96xf32>
    %c1 = arith.constant 1 : index
    %c0_8 = arith.constant 0 : index
    %c0_9 = arith.constant 0 : index
    %25 = vector.load %arg1[%c1, %c0_8, %c0_9] : memref<3x4x96xf32, #tpu.memory_space<vmem>>, vector<1x4x96xf32>
    %26 = vector.shape_cast %25 : vector<1x4x96xf32> to vector<4x96xf32>
    %cst_10 = arith.constant dense<0.000000e+00> : vector<16x96xf32>
    %27 = tpu.matmul %21, %26, %cst_10 {dimension_numbers = #tpu.dot_dimension_numbers<[1], [0], [0], [1], [0, 0, 1, 1], [], []>} : vector<16x4xf32>, vector<4x96xf32>, vector<16x96xf32> -> vector<16x96xf32>
    %c2 = arith.constant 2 : index
    %c0_11 = arith.constant 0 : index
    %c0_12 = arith.constant 0 : index
    %28 = vector.load %arg1[%c2, %c0_11, %c0_12] : memref<3x4x96xf32, #tpu.memory_space<vmem>>, vector<1x4x96xf32>
    %29 = vector.shape_cast %28 : vector<1x4x96xf32> to vector<4x96xf32>
    %cst_13 = arith.constant dense<0.000000e+00> : vector<16x96xf32>
    %30 = tpu.matmul %21, %29, %cst_13 {dimension_numbers = #tpu.dot_dimension_numbers<[1], [0], [0], [1], [0, 0, 1, 1], [], []>} : vector<16x4xf32>, vector<4x96xf32>, vector<16x96xf32> -> vector<16x96xf32>
    %c1_i32_14 = arith.constant 1 : i32
    %31 = tpu.dynamic_rotate %24 by %c1_i32_14 dim 0 : vector<16x96xf32>, i32 -> vector<16x96xf32>
    %cst_15 = arith.constant 0.000000e+00 : f32
    %32 = vector.shape_cast %18 : vector<16x1xi1> to vector<16x1xi1>
    %33 = vector.broadcast %32 : vector<16x1xi1> to vector<16x96xi1>
    %34 = vector.broadcast %cst_15 : f32 to vector<16x96xf32>
    %35 = arith.select %33, %34, %31 : vector<16x96xi1>, vector<16x96xf32>
    %c15_i32 = arith.constant 15 : i32
    %36 = tpu.dynamic_rotate %30 by %c15_i32 dim 0 : vector<16x96xf32>, i32 -> vector<16x96xf32>
    %cst_16 = arith.constant 0.000000e+00 : f32
    %37 = vector.shape_cast %20 : vector<16x1xi1> to vector<16x1xi1>
    %38 = vector.broadcast %37 : vector<16x1xi1> to vector<16x96xi1>
    %39 = vector.broadcast %cst_16 : f32 to vector<16x96xf32>
    %40 = arith.select %38, %39, %36 : vector<16x96xi1>, vector<16x96xf32>
    %41 = arith.addf %27, %35 : vector<16x96xf32>
    %42 = arith.addf %41, %40 : vector<16x96xf32>
    %c0_17 = arith.constant 0 : index
    %c0_18 = arith.constant 0 : index
    %43 = vector.load %arg2[%c0_17, %c0_18] : memref<1x96xf32, #tpu.memory_space<vmem>>, vector<1x96xf32>
    %44 = vector.broadcast %43 : vector<1x96xf32> to vector<16x96xf32>
    %45 = arith.addf %42, %44 : vector<16x96xf32>
    %cst_19 = arith.constant dense<0xFF800000> : vector<16xf32>
    %46 = vector.multi_reduction <maximumf>, %45, %cst_19 [1] : vector<16x96xf32> to vector<16xf32>
    %47 = vector.shape_cast %46 : vector<16xf32> to vector<16x1xf32>
    %48 = vector.broadcast %47 : vector<16x1xf32> to vector<16x96xf32>
    %49 = arith.subf %45, %48 : vector<16x96xf32>
    %50 = math.exp %49 : vector<16x96xf32>
    %cst_20 = arith.constant dense<0.000000e+00> : vector<16xf32>
    %51 = vector.multi_reduction <add>, %50, %cst_20 [1] : vector<16x96xf32> to vector<16xf32>
    %52 = vector.shape_cast %51 : vector<16xf32> to vector<16x1xf32>
    %53 = tpu.reciprocal %52 {approx = true} : vector<16x1xf32> -> vector<16x1xf32>
    %54 = vector.broadcast %53 : vector<16x1xf32> to vector<16x96xf32>
    %55 = arith.mulf %50, %54 : vector<16x96xf32>
    %c0_21 = arith.constant 0 : index
    %c0_22 = arith.constant 0 : index
    %c0_23 = arith.constant 0 : index
    %56 = vector.load %arg3[%c0_21, %c0_22, %c0_23] : memref<3x96x32xf32, #tpu.memory_space<vmem>>, vector<1x96x32xf32>
    %57 = vector.shape_cast %56 : vector<1x96x32xf32> to vector<96x32xf32>
    %cst_24 = arith.constant dense<0.000000e+00> : vector<16x32xf32>
    %58 = tpu.matmul %55, %57, %cst_24 {dimension_numbers = #tpu.dot_dimension_numbers<[1], [0], [0], [1], [0, 0, 1, 1], [], []>} : vector<16x96xf32>, vector<96x32xf32>, vector<16x32xf32> -> vector<16x32xf32>
    %c1_25 = arith.constant 1 : index
    %c0_26 = arith.constant 0 : index
    %c0_27 = arith.constant 0 : index
    %59 = vector.load %arg3[%c1_25, %c0_26, %c0_27] : memref<3x96x32xf32, #tpu.memory_space<vmem>>, vector<1x96x32xf32>
    %60 = vector.shape_cast %59 : vector<1x96x32xf32> to vector<96x32xf32>
    %cst_28 = arith.constant dense<0.000000e+00> : vector<16x32xf32>
    %61 = tpu.matmul %55, %60, %cst_28 {dimension_numbers = #tpu.dot_dimension_numbers<[1], [0], [0], [1], [0, 0, 1, 1], [], []>} : vector<16x96xf32>, vector<96x32xf32>, vector<16x32xf32> -> vector<16x32xf32>
    %c2_29 = arith.constant 2 : index
    %c0_30 = arith.constant 0 : index
    %c0_31 = arith.constant 0 : index
    %62 = vector.load %arg3[%c2_29, %c0_30, %c0_31] : memref<3x96x32xf32, #tpu.memory_space<vmem>>, vector<1x96x32xf32>
    %63 = vector.shape_cast %62 : vector<1x96x32xf32> to vector<96x32xf32>
    %cst_32 = arith.constant dense<0.000000e+00> : vector<16x32xf32>
    %64 = tpu.matmul %55, %63, %cst_32 {dimension_numbers = #tpu.dot_dimension_numbers<[1], [0], [0], [1], [0, 0, 1, 1], [], []>} : vector<16x96xf32>, vector<96x32xf32>, vector<16x32xf32> -> vector<16x32xf32>
    %c1_i32_33 = arith.constant 1 : i32
    %65 = tpu.dynamic_rotate %58 by %c1_i32_33 dim 0 : vector<16x32xf32>, i32 -> vector<16x32xf32>
    %cst_34 = arith.constant 0.000000e+00 : f32
    %66 = vector.shape_cast %18 : vector<16x1xi1> to vector<16x1xi1>
    %67 = vector.broadcast %66 : vector<16x1xi1> to vector<16x32xi1>
    %68 = vector.broadcast %cst_34 : f32 to vector<16x32xf32>
    %69 = arith.select %67, %68, %65 : vector<16x32xi1>, vector<16x32xf32>
    %c15_i32_35 = arith.constant 15 : i32
    %70 = tpu.dynamic_rotate %64 by %c15_i32_35 dim 0 : vector<16x32xf32>, i32 -> vector<16x32xf32>
    %cst_36 = arith.constant 0.000000e+00 : f32
    %71 = vector.shape_cast %20 : vector<16x1xi1> to vector<16x1xi1>
    %72 = vector.broadcast %71 : vector<16x1xi1> to vector<16x32xi1>
    %73 = vector.broadcast %cst_36 : f32 to vector<16x32xf32>
    %74 = arith.select %72, %73, %70 : vector<16x32xi1>, vector<16x32xf32>
    %75 = arith.addf %61, %69 : vector<16x32xf32>
    %76 = arith.addf %75, %74 : vector<16x32xf32>
    %c0_37 = arith.constant 0 : index
    %c0_38 = arith.constant 0 : index
    %77 = vector.load %arg4[%c0_37, %c0_38] : memref<1x32xf32, #tpu.memory_space<vmem>>, vector<1x32xf32>
    %78 = vector.broadcast %77 : vector<1x32xf32> to vector<16x32xf32>
    %79 = arith.addf %76, %78 : vector<16x32xf32>
    %c0_39 = arith.constant 0 : index
    %c0_40 = arith.constant 0 : index
    %80 = vector.load %arg5[%c0_39, %c0_40] : memref<16x32xf32, #tpu.memory_space<vmem>>, vector<16x32xf32>
    tpu.vector_store %arg5[%c0_39, %c0_40], %79 {strides = array<i32>} : memref<16x32xf32, #tpu.memory_space<vmem>>, vector<16x32xf32>,
    return
  }
}

</mosaic_0001>

<bundles_post_ra>
// kernel: short_term_feature_extractor.1
= control target key start
LH: loop header
LB: loop body
LE: loop exit
PB: predicated region body
PF: predicated region fallthrough
CT: control target
= control target key end

     0   :  { %vm62_vm0 = vcmask 1043456   ;;  %vm55_vm1 = vcmask 31744   ;;  %s1215_s0 = inlined_call_operand.vmem [shape: f32[16,4], index: 0, kind: input, shape index: {}]   ;;  %s1216_s1 = inlined_call_operand.vmem [shape: f32[3,4,96], index: 1, kind: input, shape index: {}]   ;;  %s1217_s2 = inlined_call_operand.vmem [shape: f32[1,96], index: 2, kind: input, shape index: {}]   ;;  %s1218_s3 = inlined_call_operand.vmem [shape: f32[3,96,32], index: 3, kind: input, shape index: {}]   ;;  %s1219_s4 = inlined_call_operand.vmem [shape: f32[1,32], index: 4, kind: input, shape index: {}]   ;;  %s1220_s5 = inlined_call_operand.hbm [shape: f32[16,32], index: 5, kind: output, shape index: {}]  }
   0x1   :  { %v54_v0 = vld [vmem:[%s1216_s1] sm:$0xf]  ;;  %v53_v2 = vld [vmem:[%s1215_s0 + $0x8] sm:$0xff] }
   0x2   :  { %v52_v1 = vld [vmem:[%s1215_s0] sm:$0xff]  ;;  %762 = vmatprep.subr.msk.mxu0 %vm62_vm0, %v54_v0  ;;  %v672_v3 = vld [vmem:[%s1216_s1 + $0x8] sm:$0xf] }
   0x3   :  { %764 = vmatprep.mubr.msk.f32.mxu0 %vm55_vm1, %v52_v1 }
   0x4   :  { %10 = vsyncpa [#allocation3], 0  ;;  %763 = vmatpush3.msk.msra.mxu0 %vm62_vm0, %v54_v0  ;;  %v671_v4 = vld [vmem:[%s1216_s1 + $0x4] sm:$0xf]  ;;  %v21_v5 = vlaneseq  ;;  %v679_v35 = vld [vmem:[%s1217_s2] ss:$0 sm:$0xff] }
   0x5   :  { %765 = vmatmul.mubr.msk.f32.vlgmr.msra.gmra.mrb[0].mxu0 %vm55_vm1, %v53_v2  ;;  %767 = vmatprep.subr.msk.mxu0 %vm62_vm0, %v672_v3  ;;  %vm334_vm8 = vcmask 785408   ;;  %v357_v41 = vld [vmem:[%s1218_s3] sm:$0xff]  ;;  %v358_v42 = vld [vmem:[%s1218_s3 + $0x8] sm:$0xff]  ;;  %v359_v46 = vld [vmem:[%s1218_s3 + $0x10] sm:$0xff]  ;;  %s965_s19 = smov [#allocation2]   ;;  %vm649_vm9 = vcmask 261120  }
   0x6   :  { %768 = vmatpush3.msk.msra.mxu0 %vm62_vm0, %v672_v3  ;;  %769 = vmatprep.mubr.msk.f32.mxu0 %vm55_vm1, %v52_v1  ;;  %v1025_v6 = vshrl.u32 %v21_v5, 7  ;;  %v694_v43 = vld [vmem:[%s1218_s3 + $0xc0] sm:$0xff]  ;;  %v858_v44 = vpack.c.bf16 %v358_v42, %v357_v41  ;;  %v695_v45 = vld [vmem:[%s1218_s3 + $0xc8] sm:$0xff]  ;;  %v360_v47 = vld [vmem:[%s1218_s3 + $0x18] sm:$0xff]  ;;  %s657_s20 = sshll.u32 %s965_s19, 4  ;;  %s658_s20 = int_to_ptr.vmem [resolvable:$true] %s657_s20 }
   0x7   :  { %772 = vmatprep.subr.msk.mxu0 %vm62_vm0, %v671_v4  ;;  %v882_v48 = vpack.c.bf16 %v695_v45, %v694_v43  ;;  %v862_v49 = vpack.c.bf16 %v360_v47, %v359_v46  ;;  %v696_v50 = vld [vmem:[%s1218_s3 + $0xd0] sm:$0xff]  ;;  %v697_v51 = vld [vmem:[%s1218_s3 + $0xd8] sm:$0xff]  ;;  %v361_v63 = vld [vmem:[%s1218_s3 + $0x20] sm:$0xff]  ;;  %s941_s21 = scalar_lea.vmem %s658_s20, 256  ;;  %p946_p1 = scmp.lt.s32.totalorder %s658_s20, %s658_s20 }
   0x8   :  { %v23_v7 = vadd.s32 8, %v1025_v6  ;;  %vm225_vm2 = vcmp.lt.s32.totalorder %v1025_v6, 1  ;;  %v28_v13 = vand.u32 7, %v1025_v6  ;;  %vm236_vm4 = vcmp.lt.s32.totalorder %v1025_v6, 7  ;;  %859 = vmatprep.subr.bf16.mxu1 %v858_v44  ;;  %v362_v0 = vld [vmem:[%s1218_s3 + $0x28] sm:$0xff]  ;;  %v363_v5 = vld [vmem:[%s1218_s3 + $0x30] sm:$0xff]  ;;  %p942_p0 = scmp.ne.s32.totalorder %s658_s20, %s941_s21  ;;  %p947_p2 = scmp.lt.s32.totalorder %s941_s21, %s941_s21 }
   0x9   :  { %770 = vmatmul.mubr.msk.f32.vlgmr.msra.gmra.mrb[2].mxu0 %vm55_vm1, %v53_v2  ;;  %v886_v52 = vpack.c.bf16 %v697_v51, %v696_v50  ;;  %861 = vmatpush3.bf16.msra.mxu1 %v858_v44  ;;  %v699_v3 = vld [vmem:[%s1218_s3 + $0xe8] sm:$0xff]  ;;  %v688_v43 = vld [vmem:[%s1218_s3 + $0x90] sm:$0xff]  ;;  %v689_v44 = vld [vmem:[%s1218_s3 + $0x98] sm:$0xff] }
   0xa   :  { %773 = vmatpush3.msk.msra.mxu0 %vm62_vm0, %v671_v4  ;;  %774 = vmatprep.mubr.msk.f32.mxu0 %vm55_vm1, %v52_v1  ;;  %v35_v11 = vand.u32 7, %v23_v7  ;;  %vm1043_vm6 = vcmp.eq.s32.totalorder %v28_v13, 0  ;;  %vm1051_vm7 = vcmp.eq.s32.totalorder %v28_v13, 7  ;;  %v866_v1 = vpack.c.bf16 %v362_v0, %v361_v63  ;;  %v364_v7 = vld [vmem:[%s1218_s3 + $0x38] sm:$0xff]  ;;  %v366_v13 = vld [vmem:[%s1218_s3 + $0x48] sm:$0xff]  ;;  %v690_v46 = vld [vmem:[%s1218_s3 + $0xa0] sm:$0xff]  ;;  %p948_p3 = por %p947_p2, %p946_p1 }
   0xb   :  { %883 = vmatprep.subr.bf16.mxu0 %v882_v48  ;;  %863 = vmatprep.subr.bf16.mxu1 %v862_v49  ;;  %v687_v41 = vld [vmem:[%s1218_s3 + $0x88] sm:$0xff]  ;;  %v918_v45 = vpack.c.bf16 %v689_v44, %v688_v43  ;;  %v693_v50 = vld [vmem:[%s1218_s3 + $0xb8] sm:$0xff] }
   0xc   :  { %vm1034_vm3 = vcmp.eq.s32.totalorder %v35_v11, 0  ;;  %vm1039_vm5 = vcmp.eq.s32.totalorder %v35_v11, 7  ;;  %v691_v47 = vld [vmem:[%s1218_s3 + $0xa8] sm:$0xff]  ;;  %p949_p4 = pnand %p948_p3, %p942_p0 }
   0xd   :  { %775 = vmatmul.mubr.msk.f32.vlgmr.msra.gmra.mrb[4].mxu0 %vm55_vm1, %v53_v2  ;;  %865 = vmatpush3.bf16.msra.mxu1 %v862_v49  ;;  %v698_v2 = vld [vmem:[%s1218_s3 + $0xe0] sm:$0xff]  ;;  %v692_v49 = vld [vmem:[%s1218_s3 + $0xb0] sm:$0xff] }
   0xe   :  { %885 = vmatpush3.bf16.msra.mxu0 %v882_v48  ;;  %v890_v4 = vpack.c.bf16 %v699_v3, %v698_v2  ;;  %867 = vmatprep.subr.bf16.mxu1 %v866_v1  ;;  %v922_v48 = vpack.c.bf16 %v691_v47, %v690_v46  ;;  %v926_v51 = vpack.c.bf16 %v693_v50, %v692_v49 }
   0xf   :  { %887 = vmatprep.subr.bf16.mxu0 %v886_v52 }
  0x11   :  { %869 = vmatpush3.bf16.msra.mxu1 %v866_v1 }
  0x12   :  { %889 = vmatpush3.bf16.msra.mxu0 %v886_v52 }
  0x13   :  { %891 = vmatprep.subr.bf16.mxu0 %v890_v4 }
  0x16   :  { %893 = vmatpush3.bf16.msra.mxu0 %v890_v4 }
  0xd8   :  { %v766_v8 = vpop.f32.mrb[0].mxu0 }
  0xd9   :  { %v224_v9 = vrot.slane %v766_v8, 7  ;;  %v132_v10 = vpop.f32.mrb[1].mxu0  ;;  %v870_v8 = vpack.c.bf16 %v364_v7, %v363_v5  ;;  %v710_v7 = vld [vmem:[%s1219_s4] ss:$0 sm:$0xff] }
  0xda   :  { %v223_v12 = vrot.slane %v132_v10, 7  ;;  %v701_v10 = vld [vmem:[%s1218_s3 + $0xf8] sm:$0xff] }
  0xdb   :  { %871 = vmatprep.subr.bf16.mxu1 %v870_v8 }
  0xdc   :  { %v771_v14 = vpop.f32.mrb[2].mxu0  ;;  %v226_v15 = vsel %vm225_vm2, %v223_v12, %v224_v9  ;;  %v227_v16 = vsel %vm225_vm2, %v224_v9, %v223_v12  ;;  %v700_v9 = vld [vmem:[%s1218_s3 + $0xf0] sm:$0xff]  ;;  %v365_v12 = vld [vmem:[%s1218_s3 + $0x40] sm:$0xff]  ;;  %873 = vmatpush3.bf16.msra.mxu1 %v870_v8 }
  0xdd   :  { %v235_v17 = vrot.slane %v771_v14, 1  ;;  %v214_v18 = vpop.f32.mrb[3].mxu0  ;;  %v233_v23 = vsel %vm1034_vm3, 0.0, %v226_v15  ;;  %v232_v30 = vsel %vm1043_vm6, 0.0, %v227_v16  ;;  %v894_v11 = vpack.c.bf16 %v701_v10, %v700_v9  ;;  %v702_v14 = vld [vmem:[%s1218_s3 + $0x100] sm:$0xff]  ;;  %v703_v16 = vld [vmem:[%s1218_s3 + $0x108] sm:$0xff] }
  0xde   :  { %v234_v20 = vrot.slane %v214_v18, 1  ;;  %v874_v15 = vpack.c.bf16 %v366_v13, %v365_v12  ;;  %v368_v18 = vld [vmem:[%s1218_s3 + $0x58] sm:$0xff] }
  0xdf   :  { %895 = vmatprep.subr.bf16.mxu0 %v894_v11 }
  0xe0   :  { %v238_v24 = vsel %vm236_vm4, %v235_v17, %v234_v20  ;;  %v776_v25 = vpop.f32.mrb[4].mxu0  ;;  %v237_v27 = vsel %vm236_vm4, %v234_v20, %v235_v17  ;;  %v367_v17 = vld [vmem:[%s1218_s3 + $0x50] sm:$0xff]  ;;  %897 = vmatpush3.bf16.msra.mxu0 %v894_v11  ;;  %v898_v20 = vpack.c.bf16 %v703_v16, %v702_v14  ;;  %875 = vmatprep.subr.bf16.mxu1 %v874_v15 }
  0xe1   :  { %v244_v28 = vsel %vm1039_vm5, 0.0, %v238_v24  ;;  %v320_v29 = vadd.f32 %v776_v25, %v233_v23  ;;  %v314_v31 = vpop.f32.mrb[5].mxu0  ;;  %v243_v34 = vsel %vm1051_vm7, 0.0, %v237_v27  ;;  %v878_v23 = vpack.c.bf16 %v368_v18, %v367_v17  ;;  %877 = vmatpush3.bf16.msra.mxu1 %v874_v15  ;;  %v704_v24 = vld [vmem:[%s1218_s3 + $0x110] sm:$0xff]  ;;  %v705_v25 = vld [vmem:[%s1218_s3 + $0x118] sm:$0xff] }
  0xe2   :  { %v315_v32 = vadd.f32 %v314_v31, %v232_v30  ;;  %899 = vmatprep.subr.bf16.mxu0 %v898_v20  ;;  %v902_v27 = vpack.c.bf16 %v705_v25, %v704_v24 }
  0xe3   :  { %v324_v33 = vadd.f32 %v320_v29, %v244_v28  ;;  %879 = vmatprep.subr.bf16.mxu1 %v878_v23  ;;  %v682_v28 = vld [vmem:[%s1218_s3 + $0x60] sm:$0xff]  ;;  %v683_v29 = vld [vmem:[%s1218_s3 + $0x68] sm:$0xff] }
  0xe4   :  { %v323_v36 = vadd.f32 %v315_v32, %v243_v34  ;;  %901 = vmatpush3.bf16.msra.mxu0 %v898_v20  ;;  %v906_v30 = vpack.c.bf16 %v683_v29, %v682_v28 }
  0xe5   :  { %v333_v39 = vadd.f32 %v679_v35, %v324_v33  ;;  %881 = vmatpush3.bf16.msra.mxu1 %v878_v23  ;;  %903 = vmatprep.subr.bf16.mxu0 %v902_v27 }
  0xe6   :  { %v332_v37 = vadd.f32 %v679_v35, %v323_v36  ;;  %907 = vmatprep.subr.bf16.mxu1 %v906_v30  ;;  %v684_v35 = vld [vmem:[%s1218_s3 + $0x70] sm:$0xff]  ;;  %v685_v36 = vld [vmem:[%s1218_s3 + $0x78] sm:$0xff] }
  0xe7   :  { %v338_v40 = vsel %vm334_vm8, %v333_v39, -inf }
  0xe8   :  { %v335_v38 = vsel %vm334_vm8, %v332_v37, -inf  ;;  %905 = vmatpush3.bf16.msra.mxu0 %v902_v27 }
  0xe9   :  { %336 = vmax.xlane.f32.xlu0 %v335_v38 }
  0xed   :  { %339 = vmax.xlane.f32.xlu0 %v338_v40  ;;  %v686_v40 = vld [vmem:[%s1218_s3 + $0x80] sm:$0xff] }
  0xee   :  { %v914_v42 = vpack.c.bf16 %v687_v41, %v686_v40 }
 0x176   :  { %v337_v53 = vpop.xlane.xlu0 %336 }
 0x177   :  { %v341_v54 = vsub.f32 %v332_v37, %v337_v53 }
 0x179   :  { %v343_v55 = vmul.f32 1.442695, %v341_v54 }
 0x17a   :  { %v340_v56 = vpop.xlane.xlu0 %339 }
 0x17b   :  { %933 = vpow2.f32 %v343_v55  ;;  %v342_v57 = vsub.f32 %v333_v39, %v340_v56  ;;  %v910_v39 = vpack.c.bf16 %v685_v36, %v684_v35 }
 0x17d   :  { %v345_v58 = vmul.f32 1.442695, %v342_v57 }
 0x17f   :  { %935 = vpow2.f32 %v345_v58 }
 0x185   :  { %v934_v59 = vpop.eup %933 }
 0x186   :  { %v347_v60 = vsel %vm334_vm8, %v934_v59, 0.0 }
 0x187   :  { %348 = vadd.xlane.f32.xlu1 %v347_v60 }
 0x189   :  { %v936_v61 = vpop.eup %935 }
 0x18a   :  { %v350_v62 = vsel %vm334_vm8, %v936_v61, 0.0 }
 0x18b   :  { %351 = vadd.xlane.f32.xlu1 %v350_v62 }
 0x214   :  { %v349_v31 = vpop.xlane.xlu1 %348 }
 0x215   :  { %937 = vrcp.f32 %v349_v31 }
 0x218   :  { %v352_v32 = vpop.xlane.xlu1 %351 }
 0x219   :  { %939 = vrcp.f32 %v352_v32 }
 0x21f   :  { %v938_v33 = vpop.eup %937 }
 0x220   :  { %v355_v34 = vmul.f32 %v938_v33, %v934_v59 }
 0x222   :  { %801 = vmatprep.mubr.msk.f32.mxu1 %vm334_vm8, %v355_v34  ;;  %828 = vmatprep.mubr.msk.f32.mxu0 %vm334_vm8, %v355_v34 }
 0x223   :  { %v940_v37 = vpop.eup %939 }
 0x224   :  { %v356_v38 = vmul.f32 %v940_v37, %v936_v61 }
 0x226   :  { %802 = vmatmul.mubr.msk.f32.vlgmr.msra.gmra.mrb[0].mxu1 %vm334_vm8, %v356_v38  ;;  %829 = vmatmul.mubr.msk.f32.vlgmr.msra.gmra.mrb[6].mxu0 %vm334_vm8, %v356_v38 }
 0x227   :  { %909 = vmatpush3.bf16.msra.mxu1 %v906_v30  ;;  %855 = vmatprep.mubr.msk.f32.mxu1 %vm334_vm8, %v355_v34 }
 0x228   :  { %911 = vmatprep.subr.bf16.mxu1 %v910_v39 }
 0x22b   :  { %913 = vmatpush3.bf16.msra.mxu1 %v910_v39 }
 0x22c   :  { %915 = vmatprep.subr.bf16.mxu1 %v914_v42 }
 0x22f   :  { %917 = vmatpush3.bf16.msra.mxu1 %v914_v42 }
 0x230   :  { %919 = vmatprep.subr.bf16.mxu1 %v918_v45 }
 0x233   :  { %921 = vmatpush3.bf16.msra.mxu1 %v918_v45 }
 0x234   :  { %923 = vmatprep.subr.bf16.mxu1 %v922_v48 }
 0x237   :  { %925 = vmatpush3.bf16.msra.mxu1 %v922_v48 }
 0x238   :  { %927 = vmatprep.subr.bf16.mxu1 %v926_v51 }
 0x23b   :  { %929 = vmatpush3.bf16.msra.mxu1 %v926_v51 }
 0x23e   :  { %856 = vmatmul.mubr.msk.f32.vlgmr.msra.gmra.mrb[2].mxu1 %vm334_vm8, %v356_v38 }
 0x2f9   :  { %v803_v52 = vpop.f32.mrb[0].mxu1  ;;  %v830_v53 = vpop.f32.mrb[6].mxu0 }
 0x2fa   :  { %v552_v54 = vrot.slane %v803_v52, 7  ;;  %v558_v55 = vrot.slane %v830_v53, 1  ;;  %v441_v56 = vpop.f32.mrb[1].mxu1  ;;  %v542_v57 = vpop.f32.mrb[7].mxu0 }
 0x2fb   :  { %v551_v58 = vrot.slane %v441_v56, 7  ;;  %v557_v59 = vrot.slane %v542_v57, 1 }
 0x2fd   :  { %v559_v60 = vsel %vm236_vm4, %v557_v59, %v558_v55  ;;  %v560_v61 = vsel %vm236_vm4, %v558_v55, %v557_v59  ;;  %v553_v62 = vsel %vm225_vm2, %v551_v58, %v552_v54  ;;  %v554_v63 = vsel %vm225_vm2, %v552_v54, %v551_v58 }
 0x2fe   :  { %v556_v0 = vsel %vm1034_vm3, 0.0, %v553_v62  ;;  %v555_v3 = vsel %vm1043_vm6, 0.0, %v554_v63  ;;  %v562_v5 = vsel %vm1039_vm5, 0.0, %v560_v61  ;;  %v561_v19 = vsel %vm1051_vm7, 0.0, %v559_v60 }
 0x311   :  { %v857_v1 = vpop.f32.mrb[2].mxu1 }
 0x312   :  { %v635_v2 = vadd.f32 %v857_v1, %v556_v0  ;;  %v629_v4 = vpop.f32.mrb[3].mxu1 }
 0x313   :  { %v630_v8 = vadd.f32 %v629_v4, %v555_v3 }
 0x314   :  { %v639_v6 = vadd.f32 %v635_v2, %v562_v5 }
 0x315   :  { %v638_v9 = vadd.f32 %v630_v8, %v561_v19 }
 0x316   :  { %v648_v10 = vadd.f32 %v710_v7, %v639_v6 }
 0x317   :  { %v647_v22 = vadd.f32 %v710_v7, %v638_v9 }
 0x318   :  { %651 = vst.msk [vmem:[#allocation2 + $0x8] sm:$0xff] %vm649_vm9, %v648_v10 }
 0x319   :  { %650 = vst.msk [vmem:[#allocation2] sm:$0xff] %vm649_vm9, %v647_v22 }
 0x31a   :  { %952 = shalt.err (!%p949_p4)
}
 0x31b   :  { %s953_s23 = scalar_lea.hbm %s1220_s5, 256 }
 0x31c   :  { %p954_p5 = scmp.ne.s32.totalorder %s1220_s5, %s953_s23  ;;  %p957_p6 = scmp.lt.u32.totalorder %s953_s23, %s1220_s5 }
 0x31e   :  { %p959_p7 = pnand %p957_p6, %p954_p5 }
 0x320   :  { %962 = shalt.err (!%p959_p7)
}
 0x321   :  { %s966_s0 = smov 128   ;;  %s967_s1 = smov 8  }
 0x322   :  { %663 = dma.vmem_to_hbm [thread:$0]  %s658_s20, 256, %s1220_s5, [#allocation3], %s966_s0, %s966_s0, %s967_s1  }
 0x323   :  { %963 = dma.done.wait [#allocation3], 256  }
 0x324   :  { %964 = vsyncadd [#allocation3], 4294967040 }
 0x325   :  { %667 = vsyncpa [#allocation3], 1 }

</bundles_post_ra>
